<compile_context>
chip_gen: v6e
topology: v6e:2x2x1
jax: 0.10.0
libtpu: 0.0.40
codegen_flags: <defaults>
</compile_context>

<pallas_src>
import functools

import jax
import jax.numpy as jnp
from jax import lax
from jax.experimental import pallas as pl
from jax.experimental.pallas import tpu as pltpu


def _mha_kernel(x_kv_ref, x_q_ref, wq_ref, wkv_ref, bq_ref, wo_ref, bo_ref,
                o_ref, q_s, kv_s, *, num_heads, cp):
    """One (batch, query-tile) step, all heads via fori_loop.

    x_kv_ref: (1, C, S)     f32  full tokens (K/V projection); channels x tokens
    x_q_ref : (1, C, TQ)    f32  query-tile tokens (Q projection + residual)
    wq_ref  : (H*cp, C)     bf16 q projection, 1/sqrt(c) pre-folded, head-dim padded
    wkv_ref : (2*H*cp, C)   bf16 fused k (rows [0:H*cp)) and v (rows [H*cp:2*H*cp))
    bq_ref  : (H*cp, 1)     f32  q bias (scaled, padded with zeros)
    wo_ref  : (H, C, cp)    bf16 per-head slice of the to_out 1x1 conv weight
    bo_ref  : (C, 1)        f32  to_out bias + folded value-bias contribution
    o_ref   : (1, C, TQ)    f32  output tile (residual included), lane-dense
    q_s     : (H*cp, TQ)    bf16 VMEM scratch
    kv_s    : (2*H*cp, S)   bf16 VMEM scratch
    """
    hcp = num_heads * cp

    x_kv_bf = x_kv_ref[0].astype(jnp.bfloat16)          # (C, S)
    x_q_f32 = x_q_ref[0]                                 # (C, TQ) f32 (residual path)
    x_q_bf = x_q_f32.astype(jnp.bfloat16)

    # Projections: one fused K/V MXU pass over all heads + keys, one small Q pass
    # for this query tile. Cast to bf16 exactly once (MXU operands only).
    q_s[...] = (jnp.dot(wq_ref[...], x_q_bf, preferred_element_type=jnp.float32)
                + bq_ref[...]).astype(jnp.bfloat16)                      # (H*cp, TQ)
    kv_s[...] = jnp.dot(wkv_ref[...], x_kv_bf,
                        preferred_element_type=jnp.float32).astype(jnp.bfloat16)

    def head_body(h, acc):
        lo = pl.multiple_of(h * cp, cp)
        vlo = pl.multiple_of(hcp + h * cp, cp)
        q_h = q_s[pl.ds(lo, cp), :]                       # (cp, TQ) bf16
        k_h = kv_s[pl.ds(lo, cp), :]                      # (cp, S)  bf16
        v_h = kv_s[pl.ds(vlo, cp), :]                     # (cp, S)  bf16

        # scores^T: keys on sublanes, queries on lanes (scale folded into q).
        s_t = lax.dot_general(k_h, q_h, (((0,), (0,)), ((), ())),
                              preferred_element_type=jnp.float32)        # (S, TQ)

        # softmax over keys (axis 0), f32 stats; reciprocal goes to the EUP slot.
        m = jnp.max(s_t, axis=0, keepdims=True)                          # (1, TQ)
        e = jnp.exp(s_t - m)
        p = (e * pl.reciprocal(jnp.sum(e, axis=0, keepdims=True),
                               approx=True)).astype(jnp.bfloat16)        # (S, TQ)

        # out_h[ci, q] = sum_t v_h[ci, t] * p[t, q]
        out_h = jnp.dot(v_h, p, preferred_element_type=jnp.float32)      # (cp, TQ)

        # per-head slice of the to_out 1x1 conv, accumulated in f32.
        return acc + jnp.dot(wo_ref[h], out_h.astype(jnp.bfloat16),
                             preferred_element_type=jnp.float32)

    acc0 = x_q_f32 + bo_ref[...]                          # residual + folded bias
    o_ref[0] = lax.fori_loop(0, num_heads, head_body, acc0)


def init_params(key, c, num_heads):
    """Deterministic synthetic parameters matching the PyTorch module shapes."""
    k1, k2, k3, k4 = jax.random.split(key, 4)
    # Conv2d(c, 3*num_heads*c, 1) -> weight (3*num_heads*c, c), bias (3*num_heads*c,)
    w_qkv = jax.random.normal(k1, (3 * num_heads * c, c), jnp.float32) * 0.1
    b_qkv = jax.random.normal(k2, (3 * num_heads * c,), jnp.float32) * 0.1
    # Conv2d(num_heads*c, c, 1) -> weight (c, num_heads*c), bias (c,)
    w_out = jax.random.normal(k3, (c, num_heads * c), jnp.float32) * 0.1
    b_out = jax.random.normal(k4, (c,), jnp.float32) * 0.1
    return w_qkv, b_qkv, w_out, b_out


def prepare_kernel_params(w_qkv, b_qkv, w_out, b_out, c, num_heads):
    scale = c ** (-0.5)
    # Pad the per-head channel dim to the bf16 sublane tile so per-head slices are
    # whole-sublane and the MXU never sees sub-tile fragments. Zero rows are free.
    cp = ((c + 15) // 16) * 16

    # qkv conv output channel index = head*3c + j; j in [0,c)=q, [c,2c)=k, [2c,3c)=v
    w_r = w_qkv.reshape(num_heads, 3, c, c)            # (head, {q,k,v}, out_j, in_c)
    b_r = b_qkv.reshape(num_heads, 3, c)

    def pad_heads(w):                                   # (H, c, C) -> (H*cp, C)
        return jnp.pad(w, ((0, 0), (0, cp - c), (0, 0))).reshape(num_heads * cp, c)

    wq = pad_heads(w_r[:, 0] * scale)                   # scale folded into q
    wk = pad_heads(w_r[:, 1])                           # key bias dropped (invariant)
    wv = pad_heads(w_r[:, 2])
    wkv = jnp.concatenate([wk, wv], axis=0)             # single fused K/V projection
    bq = jnp.pad(b_r[:, 0] * scale, ((0, 0), (0, cp - c))).reshape(num_heads * cp, 1)

    # to_out input channel index = ci*num_heads + head (ci-major, head-minor)
    wo3 = jnp.transpose(w_out.reshape(c, c, num_heads), (2, 0, 1))   # (head, out_c, ci)
    # fold value bias: attn @ (v + bv) = attn @ v + bv  (rows of attn sum to 1)
    bo_eff = (b_out + jnp.einsum('hoc,hc->o', wo3, b_r[:, 2])).reshape(c, 1)
    wo3p = jnp.pad(wo3, ((0, 0), (0, 0), (0, cp - c)))               # (head, out_c, cp)

    return (wq.astype(jnp.bfloat16), wkv.astype(jnp.bfloat16),
            bq.astype(jnp.float32), wo3p.astype(jnp.bfloat16),
            bo_eff.astype(jnp.float32), cp)


def multi_head_attention_block(x_nchw, w_qkv, b_qkv, w_out, b_out, num_heads,
                               q_tile=128):
    b, c, h, w = x_nchw.shape
    S = h * w
    x_cs = x_nchw.reshape(b, c, S)                      # NCHW flatten; no transpose

    wq, wkv, bq, wo3, bo, cp = prepare_kernel_params(
        w_qkv, b_qkv, w_out, b_out, c, num_heads)
    hcp = num_heads * cp

    # Query-tile the token axis when it divides evenly (lane-dense tiles); otherwise
    # fall back to a single full-width tile (block == full dim is always legal).
    if S % q_tile == 0 and S > q_tile:
        TQ = q_tile
    else:
        TQ = S
    n_q = S // TQ

    kernel = functools.partial(_mha_kernel, num_heads=num_heads, cp=cp)

    out = pl.pallas_call(
        kernel,
        out_shape=jax.ShapeDtypeStruct((b, c, S), jnp.float32),
        grid_spec=pltpu.PrefetchScalarGridSpec(
            num_scalar_prefetch=0,
            grid=(b, n_q),
            in_specs=[
                pl.BlockSpec((1, c, S), lambda bi, qi: (bi, 0, 0)),      # x (K/V)
                pl.BlockSpec((1, c, TQ), lambda bi, qi: (bi, 0, qi)),    # x (Q tile)
                pl.BlockSpec((hcp, c), lambda bi, qi: (0, 0)),           # Wq (scaled)
                pl.BlockSpec((2 * hcp, c), lambda bi, qi: (0, 0)),       # Wk|Wv fused
                pl.BlockSpec((hcp, 1), lambda bi, qi: (0, 0)),           # bq (scaled)
                pl.BlockSpec((num_heads, c, cp), lambda bi, qi: (0, 0, 0)),  # Wo/head
                pl.BlockSpec((c, 1), lambda bi, qi: (0, 0)),             # bo (folded)
            ],
            out_specs=pl.BlockSpec((1, c, TQ), lambda bi, qi: (bi, 0, qi)),
            scratch_shapes=[
                pltpu.VMEM((hcp, TQ), jnp.bfloat16),                     # q
                pltpu.VMEM((2 * hcp, S), jnp.bfloat16),                  # k|v
            ],
        ),
        compiler_params=pltpu.CompilerParams(
            dimension_semantics=("parallel", "parallel")),
    )(x_cs, x_cs, wq, wkv, bq, wo3, bo)

    return out.reshape(b, c, h, w)                      # already NCHW


def reference(x, w_qkv, b_qkv, w_out, b_out, num_heads):
    """Pure-JAX re-implementation of the PyTorch forward, for verification."""
    b, c, h, w = x.shape
    qkv = jnp.einsum('oc,nchw->nohw', w_qkv, x) + b_qkv[None, :, None, None]
    qkv = qkv.reshape(b, num_heads, 3 * c, h, w)
    q, k, v = qkv[:, :, :c], qkv[:, :, c:2 * c], qkv[:, :, 2 * c:]
    q = q.transpose(0, 1, 3, 4, 2).reshape(b * num_heads, h * w, c)
    k = k.reshape(b * num_heads, c, h * w)
    v = v.transpose(0, 1, 3, 4, 2).reshape(b * num_heads, h * w, c)
    dots = jnp.einsum('bsc,bct->bst', q, k) * c ** (-0.5)
    attn = jax.nn.softmax(dots, axis=-1)
    out = jnp.einsum('bst,btc->bsc', attn, v)
    out = out.reshape(b, num_heads, h, w, c).transpose(0, 4, 1, 2, 3)
    out = out.reshape(b, num_heads * c, h, w)
    final = jnp.einsum('oc,nchw->nohw', w_out, out) + b_out[None, :, None, None]
    return final + x


if __name__ == "__main__":
    key = jax.random.PRNGKey(0)
    kx, kp = jax.random.split(key)

    b, c, h, w = 2, 4, 16, 16
    num_heads = 4

    x = jax.random.normal(kx, (b, c, h, w), jnp.float32)
    w_qkv, b_qkv, w_out, b_out = init_params(kp, c, num_heads)

    out = multi_head_attention_block(x, w_qkv, b_qkv, w_out, b_out, num_heads)
    out = jax.block_until_ready(out)

    ref = reference(x, w_qkv, b_qkv, w_out, b_out, num_heads)
    assert out.shape == (b, c, h, w)
    # bf16 MXU operands + approx reciprocal + bias folding => not bit-identical.
    err = float(jnp.max(jnp.abs(out - ref)))
    assert jnp.allclose(out, ref, atol=2e-2, rtol=2e-2), err

    print("KERNEL_OK")
</pallas_src>

<mosaic_0001>
module attributes {stable_mosaic.version = 11 : i64} {
  func.func @_mha_kernel(%arg0: i32, %arg1: i32, %arg2: memref<1x4x256xf32, #tpu.memory_space<vmem>>, %arg3: memref<1x4x128xf32, #tpu.memory_space<vmem>>, %arg4: memref<64x4xbf16, #tpu.memory_space<vmem>>, %arg5: memref<128x4xbf16, #tpu.memory_space<vmem>>, %arg6: memref<64x1xf32, #tpu.memory_space<vmem>>, %arg7: memref<4x4x16xbf16, #tpu.memory_space<vmem>>, %arg8: memref<4x1xf32, #tpu.memory_space<vmem>>, %arg9: memref<1x4x128xf32, #tpu.memory_space<vmem>>, %arg10: memref<64x128xbf16, #tpu.memory_space<vmem>>, %arg11: memref<128x256xbf16, #tpu.memory_space<vmem>>) attributes {dimension_semantics = [#tpu.dimension_semantics<parallel>, #tpu.dimension_semantics<parallel>], iteration_bounds = array<i64: 2, 2>, scalar_prefetch = 0 : i64, scratch_operands = 2 : i64, tpu.core_type = #tpu.core_type<tc>, window_params = [{transform_indices = @transform_0, window_bounds = array<i64: 1, 4, 256>}, {transform_indices = @transform_1, window_bounds = array<i64: 1, 4, 128>}, {pipeline_mode = #tpu.pipeline_mode<synchronous>, transform_indices = @transform_2, window_bounds = array<i64: 64, 4>}, {pipeline_mode = #tpu.pipeline_mode<synchronous>, transform_indices = @transform_3, window_bounds = array<i64: 128, 4>}, {pipeline_mode = #tpu.pipeline_mode<synchronous>, transform_indices = @transform_4, window_bounds = array<i64: 64, 1>}, {pipeline_mode = #tpu.pipeline_mode<synchronous>, transform_indices = @transform_5, window_bounds = array<i64: 4, 4, 16>}, {pipeline_mode = #tpu.pipeline_mode<synchronous>, transform_indices = @transform_6, window_bounds = array<i64: 4, 1>}, {transform_indices = @transform_7, window_bounds = array<i64: 1, 4, 128>}]} {
    %c0 = arith.constant 0 : index
    %c0_0 = arith.constant 0 : index
    %c0_1 = arith.constant 0 : index
    %0 = vector.load %arg2[%c0, %c0_0, %c0_1] : memref<1x4x256xf32, #tpu.memory_space<vmem>>, vector<1x4x256xf32>
    %1 = vector.shape_cast %0 : vector<1x4x256xf32> to vector<4x256xf32>
    %2 = arith.truncf %1 : vector<4x256xf32> to vector<4x256xbf16>
    %c0_2 = arith.constant 0 : index
    %c0_3 = arith.constant 0 : index
    %c0_4 = arith.constant 0 : index
    %3 = vector.load %arg3[%c0_2, %c0_3, %c0_4] : memref<1x4x128xf32, #tpu.memory_space<vmem>>, vector<1x4x128xf32>
    %4 = vector.shape_cast %3 : vector<1x4x128xf32> to vector<4x128xf32>
    %5 = arith.truncf %4 : vector<4x128xf32> to vector<4x128xbf16>
    %c0_5 = arith.constant 0 : index
    %c0_6 = arith.constant 0 : index
    %6 = vector.load %arg4[%c0_5, %c0_6] : memref<64x4xbf16, #tpu.memory_space<vmem>>, vector<64x4xbf16>
    %cst = arith.constant dense<0.000000e+00> : vector<64x128xf32>
    %7 = tpu.matmul %6, %5, %cst {dimension_numbers = #tpu.dot_dimension_numbers<[1], [0], [0], [1], [0, 0, 1, 1], [], []>} : vector<64x4xbf16>, vector<4x128xbf16>, vector<64x128xf32> -> vector<64x128xf32>
    %c0_7 = arith.constant 0 : index
    %c0_8 = arith.constant 0 : index
    %8 = vector.load %arg6[%c0_7, %c0_8] : memref<64x1xf32, #tpu.memory_space<vmem>>, vector<64x1xf32>
    %9 = vector.broadcast %8 : vector<64x1xf32> to vector<64x128xf32>
    %10 = arith.addf %7, %9 : vector<64x128xf32>
    %11 = arith.truncf %10 : vector<64x128xf32> to vector<64x128xbf16>
    %c0_9 = arith.constant 0 : index
    %c0_10 = arith.constant 0 : index
    %12 = vector.load %arg10[%c0_9, %c0_10] : memref<64x128xbf16, #tpu.memory_space<vmem>>, vector<64x128xbf16>
    tpu.vector_store %arg10[%c0_9, %c0_10], %11 {strides = array<i32>} : memref<64x128xbf16, #tpu.memory_space<vmem>>, vector<64x128xbf16>,
    %c0_11 = arith.constant 0 : index
    %c0_12 = arith.constant 0 : index
    %13 = vector.load %arg5[%c0_11, %c0_12] : memref<128x4xbf16, #tpu.memory_space<vmem>>, vector<128x4xbf16>
    %cst_13 = arith.constant dense<0.000000e+00> : vector<128x256xf32>
    %14 = tpu.matmul %13, %2, %cst_13 {dimension_numbers = #tpu.dot_dimension_numbers<[1], [0], [0], [1], [0, 0, 1, 1], [], []>} : vector<128x4xbf16>, vector<4x256xbf16>, vector<128x256xf32> -> vector<128x256xf32>
    %15 = arith.truncf %14 : vector<128x256xf32> to vector<128x256xbf16>
    %c0_14 = arith.constant 0 : index
    %c0_15 = arith.constant 0 : index
    %16 = vector.load %arg11[%c0_14, %c0_15] : memref<128x256xbf16, #tpu.memory_space<vmem>>, vector<128x256xbf16>
    tpu.vector_store %arg11[%c0_14, %c0_15], %15 {strides = array<i32>} : memref<128x256xbf16, #tpu.memory_space<vmem>>, vector<128x256xbf16>,
    %c0_16 = arith.constant 0 : index
    %c0_17 = arith.constant 0 : index
    %17 = vector.load %arg8[%c0_16, %c0_17] : memref<4x1xf32, #tpu.memory_space<vmem>>, vector<4x1xf32>
    %18 = vector.broadcast %17 : vector<4x1xf32> to vector<4x128xf32>
    %19 = arith.addf %4, %18 : vector<4x128xf32>
    %c0_i32 = arith.constant 0 : i32
    %c4_i32 = arith.constant 4 : i32
    %20 = arith.addi %c0_i32, %c4_i32 : i32
    %c1_i32 = arith.constant 1 : i32
    %21 = scf.for %arg12 = %c0_i32 to %20 step %c1_i32 iter_args(%arg13 = %19) -> (vector<4x128xf32>)  : i32 {
      %c16_i32 = arith.constant 16 : i32
      %25 = arith.muli %arg12, %c16_i32 : i32
      %26 = tpu.assume_multiple %25, 16 : i32
      %c16_i32_22 = arith.constant 16 : i32
      %27 = arith.muli %arg12, %c16_i32_22 : i32
      %c64_i32 = arith.constant 64 : i32
      %28 = arith.addi %c64_i32, %27 : i32
      %29 = tpu.assume_multiple %28, 16 : i32
      %30 = arith.index_cast %26 : i32 to index
      %c0_23 = arith.constant 0 : index
      %31 = vector.load %arg10[%30, %c0_23] : memref<64x128xbf16, #tpu.memory_space<vmem>>, vector<16x128xbf16>
      %32 = arith.index_cast %26 : i32 to index
      %c0_24 = arith.constant 0 : index
      %33 = vector.load %arg11[%32, %c0_24] : memref<128x256xbf16, #tpu.memory_space<vmem>>, vector<16x256xbf16>
      %34 = arith.index_cast %29 : i32 to index
      %c0_25 = arith.constant 0 : index
      %35 = vector.load %arg11[%34, %c0_25] : memref<128x256xbf16, #tpu.memory_space<vmem>>, vector<16x256xbf16>
      %cst_26 = arith.constant dense<0.000000e+00> : vector<256x128xf32>
      %36 = tpu.matmul %33, %31, %cst_26 {dimension_numbers = #tpu.dot_dimension_numbers<[0], [0], [1], [1], [0, 1, 1, 1], [], []>} : vector<16x256xbf16>, vector<16x128xbf16>, vector<256x128xf32> -> vector<256x128xf32>
      %cst_27 = arith.constant dense<0xFF800000> : vector<128xf32>
      %37 = vector.multi_reduction <maximumf>, %36, %cst_27 [0] : vector<256x128xf32> to vector<128xf32>
      %38 = vector.shape_cast %37 : vector<128xf32> to vector<1x128xf32>
      %39 = vector.broadcast %38 : vector<1x128xf32> to vector<256x128xf32>
      %40 = arith.subf %36, %39 : vector<256x128xf32>
      %41 = math.exp %40 : vector<256x128xf32>
      %cst_28 = arith.constant dense<0.000000e+00> : vector<128xf32>
      %42 = vector.multi_reduction <add>, %41, %cst_28 [0] : vector<256x128xf32> to vector<128xf32>
      %43 = vector.shape_cast %42 : vector<128xf32> to vector<1x128xf32>
      %44 = tpu.reciprocal %43 {approx = true} : vector<1x128xf32> -> vector<1x128xf32>
      %45 = vector.broadcast %44 : vector<1x128xf32> to vector<256x128xf32>
      %46 = arith.mulf %41, %45 : vector<256x128xf32>
      %47 = arith.truncf %46 : vector<256x128xf32> to vector<256x128xbf16>
      %cst_29 = arith.constant dense<0.000000e+00> : vector<16x128xf32>
      %48 = tpu.matmul %35, %47, %cst_29 {dimension_numbers = #tpu.dot_dimension_numbers<[1], [0], [0], [1], [0, 0, 1, 1], [], []>} : vector<16x256xbf16>, vector<256x128xbf16>, vector<16x128xf32> -> vector<16x128xf32>
      %49 = arith.index_cast %arg12 : i32 to index
      %c0_30 = arith.constant 0 : index
      %c0_31 = arith.constant 0 : index
      %50 = vector.load %arg7[%49, %c0_30, %c0_31] : memref<4x4x16xbf16, #tpu.memory_space<vmem>>, vector<1x4x16xbf16>
      %51 = vector.shape_cast %50 : vector<1x4x16xbf16> to vector<4x16xbf16>
      %52 = arith.truncf %48 : vector<16x128xf32> to vector<16x128xbf16>
      %cst_32 = arith.constant dense<0.000000e+00> : vector<4x128xf32>
      %53 = tpu.matmul %51, %52, %cst_32 {dimension_numbers = #tpu.dot_dimension_numbers<[1], [0], [0], [1], [0, 0, 1, 1], [], []>} : vector<4x16xbf16>, vector<16x128xbf16>, vector<4x128xf32> -> vector<4x128xf32>
      %54 = arith.addf %arg13, %53 : vector<4x128xf32>
      scf.yield %54 : vector<4x128xf32>
    }
    %c4_i32_18 = arith.constant 4 : i32
    %c0_19 = arith.constant 0 : index
    %c0_20 = arith.constant 0 : index
    %c0_21 = arith.constant 0 : index
    %22 = vector.load %arg9[%c0_19, %c0_20, %c0_21] : memref<1x4x128xf32, #tpu.memory_space<vmem>>, vector<1x4x128xf32>
    %23 = vector.shape_cast %22 : vector<1x4x128xf32> to vector<4x128xf32>
    %24 = vector.shape_cast %21 : vector<4x128xf32> to vector<1x4x128xf32>
    tpu.vector_store %arg9[%c0_19, %c0_20, %c0_21], %24 {strides = array<i32>} : memref<1x4x128xf32, #tpu.memory_space<vmem>>, vector<1x4x128xf32>,
    return
  }
  func.func @transform_0(%arg0: i32, %arg1: i32) -> (i32, i32, i32) {
    %c0_i32 = arith.constant 0 : i32
    %c0_i32_0 = arith.constant 0 : i32
    %c0_i32_1 = arith.constant 0 : i32
    return %arg0, %c0_i32, %c0_i32_0 : i32, i32, i32
  }
  func.func @transform_1(%arg0: i32, %arg1: i32) -> (i32, i32, i32) {
    %c0_i32 = arith.constant 0 : i32
    %c0_i32_0 = arith.constant 0 : i32
    return %arg0, %c0_i32, %arg1 : i32, i32, i32
  }
  func.func @transform_2(%arg0: i32, %arg1: i32) -> (i32, i32) {
    %c0_i32 = arith.constant 0 : i32
    %c0_i32_0 = arith.constant 0 : i32
    %c0_i32_1 = arith.constant 0 : i32
    return %c0_i32, %c0_i32_0 : i32, i32
  }
  func.func @transform_3(%arg0: i32, %arg1: i32) -> (i32, i32) {
    %c0_i32 = arith.constant 0 : i32
    %c0_i32_0 = arith.constant 0 : i32
    %c0_i32_1 = arith.constant 0 : i32
    return %c0_i32, %c0_i32_0 : i32, i32
  }
  func.func @transform_4(%arg0: i32, %arg1: i32) -> (i32, i32) {
    %c0_i32 = arith.constant 0 : i32
    %c0_i32_0 = arith.constant 0 : i32
    %c0_i32_1 = arith.constant 0 : i32
    return %c0_i32, %c0_i32_0 : i32, i32
  }
  func.func @transform_5(%arg0: i32, %arg1: i32) -> (i32, i32, i32) {
    %c0_i32 = arith.constant 0 : i32
    %c0_i32_0 = arith.constant 0 : i32
    %c0_i32_1 = arith.constant 0 : i32
    %c0_i32_2 = arith.constant 0 : i32
    return %c0_i32, %c0_i32_0, %c0_i32_1 : i32, i32, i32
  }
  func.func @transform_6(%arg0: i32, %arg1: i32) -> (i32, i32) {
    %c0_i32 = arith.constant 0 : i32
    %c0_i32_0 = arith.constant 0 : i32
    %c0_i32_1 = arith.constant 0 : i32
    return %c0_i32, %c0_i32_0 : i32, i32
  }
  func.func @transform_7(%arg0: i32, %arg1: i32) -> (i32, i32, i32) {
    %c0_i32 = arith.constant 0 : i32
    %c0_i32_0 = arith.constant 0 : i32
    return %arg0, %c0_i32, %arg1 : i32, i32, i32
  }
}

</mosaic_0001>

<bundles_post_ra>
// kernel: tpu_custom_call.1
= control target key start
LH: loop header
LB: loop body
LE: loop exit
PB: predicated region body
PF: predicated region fallthrough
CT: control target
= control target key end

     0   :  { %s2681_s0 = inlined_call_operand.vmem [shape: f32[2,4,256], index: 0, kind: input, shape index: {}]   ;;  %s2682_s1 = inlined_call_operand.vmem [shape: f32[2,4,256], index: 1, kind: input, shape index: {}]   ;;  %s2683_s2 = inlined_call_operand.vmem [shape: bf16[64,4], index: 2, kind: input, shape index: {}]   ;;  %s2684_s3 = inlined_call_operand.vmem [shape: bf16[128,4], index: 3, kind: input, shape index: {}]   ;;  %s2685_s4 = inlined_call_operand.vmem [shape: f32[64,1], index: 4, kind: input, shape index: {}]   ;;  %s2686_s5 = inlined_call_operand.vmem [shape: bf16[4,4,16], index: 5, kind: input, shape index: {}]   ;;  %s2687_s6 = inlined_call_operand.vmem [shape: f32[4,1], index: 6, kind: input, shape index: {}]   ;;  %s2688_s7 = inlined_call_operand.hbm [shape: f32[2,4,256], index: 7, kind: output, shape index: {}]  }
   0x1   :  { %2693 = sst [smem:[#allocation10_spill]] %s2681_s0 }
   0x2   :  { %12 = vsyncpa [#allocation5], 0 }
   0x3   :  { %14 = vsyncpa [#allocation5 + $0x1], 0  ;;  %s2148_s24 = smov 0   ;;  %s2150_s25 = smov 0  }
   0x4   :  { %s2152_s26 = smov 0   ;;  %s2154_s27 = smov 0  }
   0x5   :  { %s2156_s28 = smov 0   ;;  %s2158_s29 = smov 0  }
   0x6   :  { %s2160_s30 = smov 0   ;;  %s2162_s8 = smov 0  }
   0x7 LB: > { %2694 = sst [smem:[#allocation7_spill]] %s2090_s30  ;;  %s1573_s9 = sadd.s32 4294967295, %s2094_s8   ;;  %s2094_s8 = sphi %s2162_s8, %s20_s8   ;;  %s2090_s30 = sphi %s2160_s30, %s2704_s30   ;;  %s2086_s29 = sphi %s2158_s29, %s2709_s29   ;;  %s2082_s28 = sphi %s2156_s28, %s2702_s28   ;;  %s2078_s27 = sphi %s2154_s27, %s2708_s27   ;;  %s2074_s26 = sphi %s2152_s26, %s2707_s26   ;;  %s2070_s25 = sphi %s2150_s25, %s2706_s25   ;;  %s2066_s24 = sphi %s2148_s24, %s2705_s24  }
   0x8   : > { %s1574_s10 = sadd.s32 4294967294, %s2094_s8   ;;  %s29_s11 = sadd.s32 1, %s2086_s29 }
   0x9   : > { %p30_p0 = scmp.ge.s32.totalorder %s29_s11, 2  ;;  %s32_s12 = sadd.s32 1, %s2090_s30 }
   0xa   : > { %p210_p1 = scmp.ne.s32.totalorder %s2074_s26, %s2070_s25  ;;  %p211_p2 = scmp.eq.s32.totalorder %s1573_s9, 3 }
   0xb   : > { %s2711_s11 = smov (%p30_p0, %s29_s11), 0  ;;  %s2713_s12 = smov (!%p30_p0, %s32_s12), %s2090_s30 }
   0xc   : > { %2695 = sst [smem:[#allocation8_spill]] %s2711_s11  ;;  %s196_s13 = ssub.s32 %s2086_s29, %s2711_s11 }
   0xd   : > { %p2199_p3 = por %p211_p2, %p210_p1  ;;  %p34_p4 = scmp.ge.s32.totalorder %s2713_s12, 2 }
   0xe   : > { %p216_p5 = scmp.ne.s32.totalorder %s2070_s25, %s2066_s24  ;;  %p217_p6 = scmp.eq.s32.totalorder %s1574_s10, 3 }
   0xf   : > { %p1577_p7 = scmp.ge.s32.totalorder %s2094_s8, 1  ;;  %s2715_s12 = smov (%p34_p4, %s2713_s12), 0 }
  0x10   : > { %2697 = sst [smem:[#allocation9_spill]] %s2715_s12  ;;  %p2208_p8 = por %p217_p6, %p216_p5 }
  0x11   : > { %p269_p9 = scmp.lt.s32.totalorder %s2094_s8, 5  ;;  %s195_s16 = ssub.s32 %s2090_s30, %s2715_s12 }
  0x12   : > { %s200_s17 = sadd.s32 1, %s2074_s26  ;;  %s197_s18 = sor.u32 %s196_s13, %s195_s16 }
  0x13   : > { %p270_p10 = pnand %p1577_p7, %p269_p9  ;;  %p198_p11 = scmp.eq.s32.totalorder %s197_s18, 0 }
  0x14   : > { %s2689_s20 = sand.u32 (!%p270_p10), 1, %s2070_s25   ;;  %p309_p12 = scmp.lt.s32.totalorder (!%p270_p10), %s2082_s28, 1 }
  0x15   : > { %s2217_s19 = scalar_select %p198_p11, %s2074_s26, %s200_s17  }
  0x16   : > { %273 = sbr.rel (%p270_p10) target bundleno = 1217 (0x4c1), region = 48  ;;  %s2226_s23 = sshll.u32 (!%p270_p10), %s2689_s20, 2 }
  0x17   : > { %p316_p13 = scmp.lt.s32.totalorder (!%p270_p10), %s2078_s27, 1  ;;  %s2699_s0 = sld [smem:[#allocation10_spill]] (!%p270_p10) }
  0x1b   : > { %v1909_v0 = vld [vmem:[%s2683_s2] sm:$0xff]   ;;  %vm407_vm0 = vcmask 31744   ;;  %v2104_v1 = vmov 0   ;;  %s310_s9 = scalar_select %p309_p12, %s2082_s28, 1  ;;  %vm420_vm1 = vcmask 1041408   ;;  %v1910_v9 = vld [vmem:[%s2683_s2 + $0x8] sm:$0xff]  }
  0x1c   : > { %1764 = vmatprep.mubr.msk.bf16.mxu0 %vm407_vm0, %v1909_v0  ;;  %677 = vmatprep.mubr.bf16.mxu1 %v2104_v1  ;;  %s317_s10 = scalar_select %p316_p13, %s2078_s27, 1  ;;  %v1911_v11 = vld [vmem:[%s2684_s3 + $0x18] sm:$0xff]   ;;  %v1912_v12 = vld [vmem:[%s2683_s2 + $0x10] sm:$0xff]   ;;  %v339_v13 = vld [vmem:[%s2685_s4] sm:$0xff] }
  0x1d   : > { %1906 = vset.pattern.permute.xlu0 %v2104_v1  ;;  %1907 = vset.pattern.permute.xlu1 %v2104_v1  ;;  %s1581_s13 = sshll.u32 %s310_s9, 1  ;;  %s1666_s16 = sshll.u32 %s310_s9, 3  ;;  %v341_v14 = vld [vmem:[%s2685_s4 + $0x10] sm:$0xff]  ;;  %v340_v15 = vld [vmem:[%s2685_s4 + $0x8] sm:$0xff]  ;;  %v342_v16 = vld [vmem:[%s2685_s4 + $0x18] sm:$0xff] }
  0x1e   : > { %s319_s17 = sadd.s32 %s1581_s13, %s317_s10  ;;  %s313_s22 = scalar_lea.vmem %s2699_s0, %s1666_s16  ;;  %349 = vperm.xlu0 %1906, %v339_v13   ;;  %359 = vperm.xlu1 %1907, %v341_v14   ;;  %v1913_v17 = vld [vmem:[%s2683_s2 + $0x18] sm:$0xff]   ;;  %v1914_v18 = vld [vmem:[%s2684_s3 + $0x20] sm:$0xff]   ;;  %v344_v20 = vld [vmem:[%s2685_s4 + $0x28] sm:$0xff] }
  0x1f   : > { %s1582_s20 = sshll.u32 %s319_s17, 2  ;;  %v323_v2 = vld [vmem:[%s313_s22] sm:$0xff]  ;;  %v345_v21 = vld [vmem:[%s2685_s4 + $0x30] sm:$0xff]  ;;  %v346_v22 = vld [vmem:[%s2685_s4 + $0x38] sm:$0xff] }
  0x20   : > { %s321_s30 = scalar_lea.vmem %s2682_s1, %s1582_s20  ;;  %v325_v3 = vcombine.high %v323_v2, %v323_v2  ;;  %v327_v4 = vpack.c.bf16 %v323_v2, %v323_v2  ;;  %v343_v19 = vld [vmem:[%s2685_s4 + $0x20] sm:$0xff]  ;;  %v1916_v24 = vld [vmem:[%s2684_s3 + $0x28] sm:$0xff]   ;;  %v1918_v27 = vld [vmem:[%s2684_s3 + $0x30] sm:$0xff]   ;;  %s2335_s20 = smov 0  }
  0x21   : > { %v2241_v5 = vld [vmem:[%s321_s30] sm:$0xf]  ;;  %v1917_v26 = vld [vmem:[%s2684_s3 + $0x8] sm:$0xff]   ;;  %v1919_v28 = vld [vmem:[%s2684_s3 + $0x10] sm:$0xff]   ;;  %s308_s30 = scalar_lea.vmem [#allocation4], %s2226_s23 }
  0x22   : > { %v330_v6 = vpack.c.bf16 %v2241_v5, %v2241_v5  ;;  %v328_v7 = vpack.c.bf16 %v325_v3, %v325_v3  ;;  %v610_v8 = vsel %vm420_vm1, %v327_v4, 0  ;;  %354 = vperm.xlu0 %1906, %v340_v15   ;;  %364 = vperm.xlu1 %1907, %v342_v16   ;;  %v1915_v23 = vld [vmem:[%s2684_s3] sm:$0xff]   ;;  %v1920_v29 = vld [vmem:[%s2684_s3 + $0x38] sm:$0xff]  }
  0x23   : > { %v840_v25 = vld [vmem:[%s2687_s6] sm:$0xf] }
  0x24   : > { %1814 = vmatprep.subr.msk.bf16.mxu0 %vm420_vm1, %v330_v6  ;;  %1812 = vmatprep.subr.msk.bf16.mxu1 %vm420_vm1, %v328_v7  ;;  %v422_v10 = vsel %vm420_vm1, %v330_v6, 0 }
  0x25   : > { %1763 = vmatpush3.bf16.msra.mxu0 %v422_v10  ;;  %1813 = vmatpush1.bf16.msra.mxu1 %v610_v8 }
  0x26   : > { %1607 = vmatprep.subr.msk.bf16.mxu0 %vm420_vm1, %v328_v7  ;;  %369 = vperm.xlu0 %1906, %v343_v19  }
  0x27   : > { %374 = vperm.xlu1 %1907, %v344_v20  }
  0x28   : > { %1765 = vmatmul.mubr.msk.bf16.vlgmr.msra.gmra.mxu0 %vm407_vm0, %v1910_v9  ;;  %1611 = vmatmul.mubr.msk.bf16.vlgmr.msra.gmra.mxu1 %vm407_vm0, %v1911_v11 }
  0x29   : > { %630 = vmatpush1.bf16.msra.mxu0 %v610_v8  ;;  %1768 = vmatprep.mubr.msk.bf16.mxu0 %vm407_vm0, %v1912_v12 }
  0x2a   : > { %687 = vmatprep.mubr.bf16.mxu1 %v2104_v1  ;;  %379 = vperm.xlu0 %1906, %v345_v21  }
  0x2b   : > { %384 = vperm.xlu1 %1907, %v346_v22  }
  0x2e   : > { %843 = vperm.xlu0 %1906, %v840_v25  }
  0x30   : > { %1769 = vmatmul.mubr.msk.bf16.gmra.mxu0 %vm407_vm0, %v1913_v17  ;;  %1612 = vmatmul.mubr.msk.bf16.gmra.mxu1 %vm407_vm0, %v1914_v18 }
  0x31   : > { %647 = vmatprep.mubr.bf16.mxu0 %v2104_v1  ;;  %697 = vmatprep.mubr.bf16.mxu1 %v2104_v1 }
  0x38   : > { %1608 = vmatmul.mubr.msk.bf16.vlgmr.msra.gmra.mxu0 %vm407_vm0, %v1915_v23  ;;  %1613 = vmatmul.mubr.msk.bf16.gmra.mxu1 %vm407_vm0, %v1916_v24 }
  0x39   : > { %657 = vmatprep.mubr.bf16.mxu0 %v2104_v1  ;;  %707 = vmatprep.mubr.bf16.mxu1 %v2104_v1 }
  0x40   : > { %1609 = vmatmul.mubr.msk.bf16.gmra.mxu0 %vm407_vm0, %v1917_v26  ;;  %1614 = vmatmul.mubr.msk.bf16.gmra.mxu1 %vm407_vm0, %v1918_v27 }
  0x41   : > { %667 = vmatprep.mubr.bf16.mxu0 %v2104_v1  ;;  %717 = vmatprep.mubr.bf16.mxu1 %v2104_v1 }
  0x48   : > { %1610 = vmatmul.mubr.msk.bf16.gmra.mxu0 %vm407_vm0, %v1919_v28  ;;  %1615 = vmatmul.mubr.msk.bf16.gmra.mxu1 %vm407_vm0, %v1920_v29 }
  0x99   : > { %v350_v30 = vpop.permute.xlu0 %349  ;;  %v360_v36 = vpop.permute.xlu1 %359 }
  0x9d   : > { %v355_v31 = vpop.permute.xlu0 %354  ;;  %v365_v37 = vpop.permute.xlu1 %364 }
  0xa1   : > { %v370_v32 = vpop.permute.xlu0 %369 }
  0xa2   : > { %v375_v43 = vpop.permute.xlu1 %374 }
  0xa5   : > { %v380_v33 = vpop.permute.xlu0 %379 }
  0xa6   : > { %v385_v57 = vpop.permute.xlu1 %384 }
  0xa9   : > { %v844_v34 = vpop.permute.xlu0 %843 }
  0xaa   : > { %v2329_v35 = vadd.f32 %v844_v34, %v2241_v5  }
  0xe8   : > { %v1766_v38 = vpop.f32.mrf.mxu0  ;;  %v679_v39 = vpop.f32.mrf.mxu1 }
  0xe9   : > { %v467_v46 = vadd.f32 %v1766_v38, %v360_v36 }
  0xea   : > { %v458_v40 = vpop.f32.mrf.mxu0  ;;  %v681_v41 = vpop.f32.mrf.mxu1 }
  0xeb   : > { %v1681_v42 = vpack.c.bf16 %v681_v41, %v679_v39  ;;  %v459_v50 = vadd.f32 %v458_v40, %v350_v30 }
  0xec   : > { %v1767_v44 = vpop.f32.mrf.mxu0  ;;  %v683_v45 = vpop.f32.mrf.mxu1 }
  0xed   : > { %830 = vst [vmem:[#allocation3 + $0x30] sm:$0xff] %v1681_v42  ;;  %v470_v47 = vadd.f32 %v1767_v44, %v365_v37 }
  0xee   : > { %v461_v48 = vpop.f32.mrf.mxu0  ;;  %v685_v49 = vpop.f32.mrf.mxu1 }
  0xef   : > { %v1701_v51 = vpack.c.bf16 %v470_v47, %v467_v46  ;;  %v462_v52 = vadd.f32 %v461_v48, %v355_v31  ;;  %v1682_v53 = vpack.c.bf16 %v685_v49, %v683_v45 }
  0xf0   : > { %v1770_v54 = vpop.f32.mrf.mxu0  ;;  %v689_v55 = vpop.f32.mrf.mxu1 }
  0xf1   : > { %1713 = vst [vmem:[#allocation2 + $0x8] sm:$0xff] %v1701_v51   ;;  %v1696_v56 = vpack.c.bf16 %v462_v52, %v459_v50  ;;  %831 = vst [vmem:[#allocation3 + $0x38] sm:$0xff] %v1682_v53  ;;  %v483_v63 = vadd.f32 %v1770_v54, %v380_v33 }
  0xf2   : > { %v474_v58 = vpop.f32.mrf.mxu0  ;;  %v691_v59 = vpop.f32.mrf.mxu1 }
  0xf3   : > { %1697 = vst [vmem:[#allocation2] sm:$0xff] %v1696_v56   ;;  %v1683_v60 = vpack.c.bf16 %v691_v59, %v689_v55  ;;  %v475_v3 = vadd.f32 %v474_v58, %v370_v32 }
  0xf4   : > { %v1771_v61 = vpop.f32.mrf.mxu0  ;;  %v693_v62 = vpop.f32.mrf.mxu1 }
  0xf5   : > { %832 = vst [vmem:[#allocation3 + $0x40] sm:$0xff] %v1683_v60  ;;  %v486_v0 = vadd.f32 %v1771_v61, %v385_v57 }
  0xf6   : > { %v477_v1 = vpop.f32.mrf.mxu0  ;;  %v695_v2 = vpop.f32.mrf.mxu1 }
  0xf7   : > { %v1711_v4 = vpack.c.bf16 %v486_v0, %v483_v63  ;;  %v478_v5 = vadd.f32 %v477_v1, %v375_v43  ;;  %v1684_v6 = vpack.c.bf16 %v695_v2, %v693_v62 }
  0xf8   : > { %v649_v7 = vpop.f32.mrf.mxu0  ;;  %v699_v8 = vpop.f32.mrf.mxu1 }
  0xf9   : > { %1715 = vst [vmem:[#allocation2 + $0x18] sm:$0xff] %v1711_v4   ;;  %v1706_v9 = vpack.c.bf16 %v478_v5, %v475_v3  ;;  %833 = vst [vmem:[#allocation3 + $0x48] sm:$0xff] %v1684_v6 }
  0xfa   : > { %v651_v10 = vpop.f32.mrf.mxu0  ;;  %v701_v11 = vpop.f32.mrf.mxu1 }
  0xfb   : > { %1714 = vst [vmem:[#allocation2 + $0x10] sm:$0xff] %v1706_v9   ;;  %v1675_v12 = vpack.c.bf16 %v651_v10, %v649_v7  ;;  %v1685_v13 = vpack.c.bf16 %v701_v11, %v699_v8 }
  0xfc   : > { %v653_v14 = vpop.f32.mrf.mxu0  ;;  %v703_v15 = vpop.f32.mrf.mxu1 }
  0xfd   : > { %824 = vst [vmem:[#allocation3] sm:$0xff] %v1675_v12  ;;  %834 = vst [vmem:[#allocation3 + $0x50] sm:$0xff] %v1685_v13 }
  0xfe   : > { %v655_v16 = vpop.f32.mrf.mxu0  ;;  %v705_v17 = vpop.f32.mrf.mxu1 }
  0xff   : > { %v1676_v18 = vpack.c.bf16 %v655_v16, %v653_v14  ;;  %v1686_v19 = vpack.c.bf16 %v705_v17, %v703_v15 }
 0x100   : > { %v659_v20 = vpop.f32.mrf.mxu0  ;;  %v709_v21 = vpop.f32.mrf.mxu1 }
 0x101   : > { %825 = vst [vmem:[#allocation3 + $0x8] sm:$0xff] %v1676_v18  ;;  %835 = vst [vmem:[#allocation3 + $0x58] sm:$0xff] %v1686_v19 }
 0x102   : > { %v661_v22 = vpop.f32.mrf.mxu0  ;;  %v711_v23 = vpop.f32.mrf.mxu1 }
 0x103   : > { %v1677_v24 = vpack.c.bf16 %v661_v22, %v659_v20  ;;  %v1687_v25 = vpack.c.bf16 %v711_v23, %v709_v21 }
 0x104   : > { %v663_v26 = vpop.f32.mrf.mxu0  ;;  %v713_v27 = vpop.f32.mrf.mxu1 }
 0x105   : > { %826 = vst [vmem:[#allocation3 + $0x10] sm:$0xff] %v1677_v24  ;;  %836 = vst [vmem:[#allocation3 + $0x60] sm:$0xff] %v1687_v25 }
 0x106   : > { %v665_v28 = vpop.f32.mrf.mxu0  ;;  %v715_v29 = vpop.f32.mrf.mxu1 }
 0x107   : > { %v1678_v30 = vpack.c.bf16 %v665_v28, %v663_v26  ;;  %v1688_v31 = vpack.c.bf16 %v715_v29, %v713_v27 }
 0x108   : > { %v669_v32 = vpop.f32.mrf.mxu0  ;;  %v719_v33 = vpop.f32.mrf.mxu1 }
 0x109   : > { %827 = vst [vmem:[#allocation3 + $0x18] sm:$0xff] %v1678_v30  ;;  %837 = vst [vmem:[#allocation3 + $0x68] sm:$0xff] %v1688_v31 }
 0x10a   : > { %v671_v34 = vpop.f32.mrf.mxu0  ;;  %v721_v36 = vpop.f32.mrf.mxu1 }
 0x10b   : > { %v1679_v37 = vpack.c.bf16 %v671_v34, %v669_v32  ;;  %v1689_v38 = vpack.c.bf16 %v721_v36, %v719_v33 }
 0x10c   : > { %v673_v39 = vpop.f32.mrf.mxu0  ;;  %v723_v40 = vpop.f32.mrf.mxu1 }
 0x10d   : > { %828 = vst [vmem:[#allocation3 + $0x20] sm:$0xff] %v1679_v37  ;;  %838 = vst [vmem:[#allocation3 + $0x70] sm:$0xff] %v1689_v38 }
 0x10e   : > { %v675_v41 = vpop.f32.mrf.mxu0  ;;  %v725_v42 = vpop.f32.mrf.mxu1 }
 0x10f   : > { %v1680_v43 = vpack.c.bf16 %v675_v41, %v673_v39  ;;  %v1690_v44 = vpack.c.bf16 %v725_v42, %v723_v40 }
 0x111   : > { %829 = vst [vmem:[#allocation3 + $0x28] sm:$0xff] %v1680_v43  ;;  %839 = vst [vmem:[#allocation3 + $0x78] sm:$0xff] %v1690_v44 }
 0x112 LB: >> { %s2344_s13 = sshll.u32 %s2102_s20, 4  ;;  %vm922_vm2 = vcmask 130048   ;;  %vm2106_vm3 = vmmov 0   ;;  %s1659_s12 = sshll.u32 %s2102_s20, 1  ;;  %s2102_s20 = sphi %s2335_s20, %s852_s20   ;;  %v2098_v35 = vphi %v2329_v35, %v2700_v35  }
 0x113   : >> { %s856_s16 = sshra.s32 %s2344_s13, 3  ;;  %s864_s17 = scalar_lea.vmem [#allocation3], %s2344_s13 }
 0x114   : >> { %s1633_s18 = sshll.u32 %s856_s16, 2  ;;  %s855_s22 = sadd.s32 64, %s2344_s13 }
 0x115   : >> { %s859_s21 = scalar_lea.vmem [#allocation2], %s1633_s18  ;;  %s867_s9 = sshra.s32 %s855_s22, 3 }
 0x116   : >> { %v1924_v46 = vld [vmem:[%s859_s21] sm:$0xff]   ;;  %s1692_s10 = sshll.u32 %s867_s9, 3  ;;  %s852_s20 = sadd.s32 1, %s2102_s20  }
 0x117   : >> { %1772 = vmatprep.subr.bf16.mxu0 %v1924_v46  ;;  %s2485_s11 = scalar_lea.vmem [#allocation3], %s1692_s10  ;;  %p849_p0 = scmp.ge.s32.totalorder %s852_s20, 4  }
 0x118   : >> { %v1921_v45 = vld [vmem:[%s864_s17] ss:$8 sps:$4 sm:$0xff]   ;;  %1773 = vmatpush3.bf16.msra.mxu0 %v1924_v46  ;;  %v1923_v47 = vld [vmem:[%s864_s17 + $0x4] ss:$8 sps:$4 sm:$0xff]   ;;  %s1403_s17 = scalar_lea.vmem %s2686_s5, %s1659_s12  ;;  %s1662_s18 = sshll.u32 (%p849_p0), %s2082_s28, 1 }
 0x119   : >> { %884 = vxpose.xlu0.c.b16.start.end [1/1] (short) %v1921_v45, 128  ;;  %s1463_s21 = sadd.s32 (%p849_p0), %s2078_s27, %s1662_s18  ;;  %s1467_s22 = sshll.u32 (%p849_p0), %s308_s30, 4  ;;  %s1468_s22 = int_to_ptr.vmem [resolvable:$true] %s1467_s22 }
 0x11a   : > { %s1663_s9 = sshll.u32 (%p849_p0), %s1463_s21, 6  ;;  %s2701_s20 = sand.u32 (%p849_p0), 1, %s2070_s25  }
 0x11b   : > { %s1465_s12 = scalar_lea.hbm (%p849_p0), %s2688_s7, %s1663_s9  ;;  %s1452_s13 = scalar_lea.sflag (%p849_p0), [#allocation5], %s2701_s20 }
 0x11c   : > { %s1994_s16 = scalar_lea.vmem (%p849_p0), %s1468_s22, 64 }
 0x11d   : > { %p1995_p1 = scmp.ne.s32.totalorder (%p849_p0), %s1468_s22, %s1994_s16 }
 0x11f   : > { %p1996_p2 = pnand (%p849_p0), %p1995_p1, %p2199_p3 }
 0x121   : > { %p1997_p4 = pneg (%p849_p0), %p1996_p2 }
 0x136   : >> { %900 = vxpose.xlu0.c.b16.start.end [1/1] (short) %v1923_v47, 128 }
 0x17b   : >> { %v892_v48 = vpop.trf.xlu0 }
 0x17c   : >> { %1774 = vmatprep.mubr.msk.bf16.mxu0 %vm922_vm2, %v892_v48 }
 0x17f   : >> { %v893_v49 = vpop.trf.xlu0 }
 0x180   : >> { %1775 = vmatmul.mubr.msk.bf16.vlgmr.msra.gmra.mxu0 %vm922_vm2, %v893_v49 }
 0x183   : >> { %v894_v50 = vpop.trf.xlu0 }
 0x184   : >> { %1778 = vmatprep.mubr.msk.bf16.mxu0 %vm922_vm2, %v894_v50 }
 0x187   : >> { %v895_v51 = vpop.trf.xlu0 }
 0x188   : >> { %1779 = vmatmul.mubr.msk.bf16.gmra.mxu0 %vm922_vm2, %v895_v51 }
 0x18b   : >> { %v896_v52 = vpop.trf.xlu0 }
 0x18c   : >> { %1782 = vmatprep.mubr.msk.bf16.mxu0 %vm922_vm2, %v896_v52 }
 0x18f   : >> { %v897_v53 = vpop.trf.xlu0 }
 0x190   : >> { %1783 = vmatmul.mubr.msk.bf16.gmra.mxu0 %vm922_vm2, %v897_v53 }
 0x193   : >> { %v898_v54 = vpop.trf.xlu0 }
 0x194   : >> { %1786 = vmatprep.mubr.msk.bf16.mxu0 %vm922_vm2, %v898_v54 }
 0x197   : >> { %v899_v55 = vpop.trf.xlu0 }
 0x198   : >> { %1787 = vmatmul.mubr.msk.bf16.gmra.mxu0 %vm922_vm2, %v899_v55 }
 0x19b   : >> { %v908_v56 = vpop.trf.xlu0 }
 0x19c   : >> { %1790 = vmatprep.mubr.msk.bf16.mxu0 %vm922_vm2, %v908_v56 }
 0x19f   : >> { %v909_v57 = vpop.trf.xlu0 }
 0x1a0   : >> { %1791 = vmatmul.mubr.msk.bf16.gmra.mxu0 %vm922_vm2, %v909_v57 }
 0x1a3   : >> { %v910_v58 = vpop.trf.xlu0 }
 0x1a4   : >> { %1794 = vmatprep.mubr.msk.bf16.mxu0 %vm922_vm2, %v910_v58 }
 0x1a7   : >> { %v911_v59 = vpop.trf.xlu0 }
 0x1a8   : >> { %1795 = vmatmul.mubr.msk.bf16.gmra.mxu0 %vm922_vm2, %v911_v59 }
 0x1ab   : >> { %v912_v60 = vpop.trf.xlu0 }
 0x1ac   : >> { %1798 = vmatprep.mubr.msk.bf16.mxu0 %vm922_vm2, %v912_v60 }
 0x1af   : >> { %v913_v61 = vpop.trf.xlu0 }
 0x1b0   : >> { %1799 = vmatmul.mubr.msk.bf16.gmra.mxu0 %vm922_vm2, %v913_v61 }
 0x1b3   : >> { %v914_v62 = vpop.trf.xlu0 }
 0x1b4   : >> { %1802 = vmatprep.mubr.msk.bf16.mxu0 %vm922_vm2, %v914_v62 }
 0x1b7   : >> { %v915_v63 = vpop.trf.xlu0 }
 0x1b8   : >> { %1803 = vmatmul.mubr.msk.bf16.gmra.mxu0 %vm922_vm2, %v915_v63 }
 0x240   : >> { %v2364_v0 = vpop.f32.mrf.mxu0 }
 0x242   : >> { %v2366_v1 = vpop.f32.mrf.mxu0 }
 0x244   : >> { %v2368_v2 = vpop.f32.mrf.mxu0 }
 0x246   : >> { %v2370_v3 = vpop.f32.mrf.mxu0 }
 0x248   : >> { %v2372_v4 = vpop.f32.mrf.mxu0 }
 0x249   : >> { %v1134_v27 = vmax.f32 %v2364_v0, %v2372_v4 }
 0x24a   : >> { %v2374_v5 = vpop.f32.mrf.mxu0 }
 0x24b   : >> { %v1132_v28 = vmax.f32 %v2366_v1, %v2374_v5 }
 0x24c   : >> { %v2376_v6 = vpop.f32.mrf.mxu0 }
 0x24d   : >> { %v1135_v25 = vmax.f32 %v2368_v2, %v2376_v6 }
 0x24e   : >> { %v2378_v7 = vpop.f32.mrf.mxu0 }
 0x24f   : >> { %v1133_v29 = vmax.f32 %v2370_v3, %v2378_v7 }
 0x250   : >> { %v2380_v8 = vpop.f32.mrf.mxu0 }
 0x251   : >> { %v1138_v32 = vmax.f32 %v1134_v27, %v2380_v8 }
 0x252   : >> { %v2382_v9 = vpop.f32.mrf.mxu0 }
 0x253   : >> { %v1136_v33 = vmax.f32 %v1132_v28, %v2382_v9 }
 0x254   : >> { %v2384_v10 = vpop.f32.mrf.mxu0 }
 0x255   : >> { %v1139_v30 = vmax.f32 %v1135_v25, %v2384_v10 }
 0x256   : >> { %v2386_v11 = vpop.f32.mrf.mxu0 }
 0x257   : >> { %v1137_v34 = vmax.f32 %v1133_v29, %v2386_v11 }
 0x258   : >> { %v2388_v12 = vpop.f32.mrf.mxu0 }
 0x259   : >> { %v1142_v38 = vmax.f32 %v1138_v32, %v2388_v12 }
 0x25a   : >> { %v2390_v13 = vpop.f32.mrf.mxu0 }
 0x25b   : >> { %v1140_v39 = vmax.f32 %v1136_v33, %v2390_v13 }
 0x25c   : >> { %v2392_v14 = vpop.f32.mrf.mxu0 }
 0x25d   : >> { %v1143_v36 = vmax.f32 %v1139_v30, %v2392_v14 }
 0x25e   : >> { %v2394_v15 = vpop.f32.mrf.mxu0 }
 0x25f   : >> { %v1141_v40 = vmax.f32 %v1137_v34, %v2394_v15 }
 0x260   : >> { %v2396_v16 = vpop.f32.mrf.mxu0 }
 0x261   : >> { %v1146_v43 = vmax.f32 %v1142_v38, %v2396_v16 }
 0x262   : >> { %v2398_v17 = vpop.f32.mrf.mxu0 }
 0x263   : >> { %v1144_v44 = vmax.f32 %v1140_v39, %v2398_v17 }
 0x264   : >> { %v2400_v18 = vpop.f32.mrf.mxu0 }
 0x265   : >> { %v1147_v41 = vmax.f32 %v1143_v36, %v2400_v18 }
 0x266   : >> { %v2402_v19 = vpop.f32.mrf.mxu0 }
 0x267   : >> { %v1145_v45 = vmax.f32 %v1141_v40, %v2402_v19 }
 0x268   : >> { %v2404_v20 = vpop.f32.mrf.mxu0 }
 0x269   : >> { %v1150_v48 = vmax.f32 %v1146_v43, %v2404_v20 }
 0x26a   : >> { %v2406_v21 = vpop.f32.mrf.mxu0 }
 0x26b   : >> { %v1148_v49 = vmax.f32 %v1144_v44, %v2406_v21 }
 0x26c   : >> { %v2408_v22 = vpop.f32.mrf.mxu0 }
 0x26d   : >> { %v1151_v46 = vmax.f32 %v1147_v41, %v2408_v22 }
 0x26e   : >> { %v2410_v23 = vpop.f32.mrf.mxu0 }
 0x26f   : >> { %v1149_v50 = vmax.f32 %v1145_v45, %v2410_v23 }
 0x270   : >> { %v2412_v24 = vpop.f32.mrf.mxu0 }
 0x271   : >> { %v1154_v53 = vmax.f32 %v1150_v48, %v2412_v24 }
 0x272   : >> { %v2416_v26 = vpop.f32.mrf.mxu0 }
 0x273   : >> { %v1152_v54 = vmax.f32 %v1148_v49, %v2416_v26 }
 0x274   : >> { %v2425_v31 = vpop.f32.mrf.mxu0 }
 0x275   : >> { %v1155_v51 = vmax.f32 %v1151_v46, %v2425_v31 }
 0x276   : >> { %v2431_v37 = vpop.f32.mrf.mxu0 }
 0x277   : >> { %v1153_v55 = vmax.f32 %v1149_v50, %v2431_v37 }
 0x278   : >> { %v2437_v42 = vpop.f32.mrf.mxu0 }
 0x279   : >> { %v1158_v58 = vmax.f32 %v1154_v53, %v2437_v42 }
 0x27a   : >> { %v2443_v47 = vpop.f32.mrf.mxu0 }
 0x27b   : >> { %v1156_v59 = vmax.f32 %v1152_v54, %v2443_v47 }
 0x27c   : >> { %v2449_v52 = vpop.f32.mrf.mxu0 }
 0x27d   : >> { %v1159_v56 = vmax.f32 %v1155_v51, %v2449_v52 }
 0x27e   : >> { %v2455_v57 = vpop.f32.mrf.mxu0 }
 0x27f   : >> { %v1157_v60 = vmax.f32 %v1153_v55, %v2455_v57  ;;  %v1161_v61 = vmax.f32 %v1158_v58, %v1159_v56 }
 0x281   : >> { %v1160_v62 = vmax.f32 %v1156_v59, %v1157_v60 }
 0x283   : >> { %v1162_v63 = vmax.f32 %v1160_v62, %v1161_v61 }
 0x285   : >> { %v1163_v25 = vrot.slane %v1162_v63, 4 }
 0x287   : >> { %v1164_v27 = vmax.f32 %v1162_v63, %v1163_v25 }
 0x289   : >> { %v1165_v28 = vrot.slane %v1164_v27, 2 }
 0x28b   : >> { %v1166_v29 = vmax.f32 %v1164_v27, %v1165_v28 }
 0x28d   : >> { %v1167_v30 = vrot.slane %v1166_v29, 1 }
 0x28f   : >> { %v2460_v32 = vmax.f32 %v1166_v29, %v1167_v30 }
 0x291   : >> { %v1169_v33 = vsub.f32 %v2366_v1, %v2460_v32  ;;  %v1170_v34 = vsub.f32 %v2370_v3, %v2460_v32  ;;  %v1171_v36 = vsub.f32 %v2364_v0, %v2460_v32  ;;  %v1172_v38 = vsub.f32 %v2368_v2, %v2460_v32 }
 0x292   : >> { %v1173_v41 = vsub.f32 %v2374_v5, %v2460_v32  ;;  %v1174_v1 = vsub.f32 %v2378_v7, %v2460_v32  ;;  %v1175_v3 = vsub.f32 %v2372_v4, %v2460_v32  ;;  %v1176_v2 = vsub.f32 %v2376_v6, %v2460_v32 }
 0x293   : >> { %v1201_v39 = vmul.f32 1.442695, %v1169_v33  ;;  %v1203_v40 = vmul.f32 1.442695, %v1170_v34  ;;  %v1205_v43 = vmul.f32 1.442695, %v1171_v36  ;;  %v1177_v5 = vsub.f32 %v2382_v9, %v2460_v32 }
 0x294   : >> { %v1207_v44 = vmul.f32 1.442695, %v1172_v38  ;;  %v1209_v0 = vmul.f32 1.442695, %v1173_v41  ;;  %v1211_v45 = vmul.f32 1.442695, %v1174_v1  ;;  %v1178_v7 = vsub.f32 %v2386_v11, %v2460_v32 }
 0x295   : >> { %1928 = vpow2.f32 %v1201_v39  ;;  %v1213_v46 = vmul.f32 1.442695, %v1175_v3  ;;  %v1215_v48 = vmul.f32 1.442695, %v1176_v2  ;;  %v1179_v4 = vsub.f32 %v2380_v8, %v2460_v32  ;;  %v1927_v11 = vld [vmem:[%s2485_s11 + $0x4] ss:$8 sps:$4 sm:$0xff]  }
 0x296   : >> { %1930 = vpow2.f32 %v1203_v40  ;;  %v1217_v6 = vmul.f32 1.442695, %v1177_v5  ;;  %v1180_v9 = vsub.f32 %v2384_v10, %v2460_v32  ;;  %v1219_v50 = vmul.f32 1.442695, %v1178_v7  ;;  %1393 = vmatprep.mubr.bf16.mxu1 %v1927_v11 }
 0x297   : >> { %1932 = vpow2.f32 %v1205_v43  ;;  %v1181_v53 = vsub.f32 %v2390_v13, %v2460_v32  ;;  %v1221_v8 = vmul.f32 1.442695, %v1179_v4  ;;  %v1182_v56 = vsub.f32 %v2394_v15, %v2460_v32 }
 0x298   : >> { %1934 = vpow2.f32 %v1207_v44  ;;  %v1223_v10 = vmul.f32 1.442695, %v1180_v9  ;;  %v1183_v13 = vsub.f32 %v2388_v12, %v2460_v32  ;;  %v1184_v63 = vsub.f32 %v2392_v14, %v2460_v32 }
 0x299   : >> { %1936 = vpow2.f32 %v1209_v0  ;;  %v1225_v60 = vmul.f32 1.442695, %v1181_v53  ;;  %v1227_v15 = vmul.f32 1.442695, %v1182_v56  ;;  %v1185_v28 = vsub.f32 %v2398_v17, %v2460_v32 }
 0x29a   : >> { %1938 = vpow2.f32 %v1211_v45  ;;  %v1229_v12 = vmul.f32 1.442695, %v1183_v13  ;;  %v1186_v33 = vsub.f32 %v2402_v19, %v2460_v32  ;;  %v1231_v14 = vmul.f32 1.442695, %v1184_v63 }
 0x29b   : >> { %1940 = vpow2.f32 %v1213_v46  ;;  %v1187_v38 = vsub.f32 %v2396_v16, %v2460_v32  ;;  %v1233_v17 = vmul.f32 1.442695, %v1185_v28  ;;  %v1188_v41 = vsub.f32 %v2400_v18, %v2460_v32 }
 0x29c   : >> { %1942 = vpow2.f32 %v1215_v48  ;;  %v1235_v19 = vmul.f32 1.442695, %v1186_v33  ;;  %v1189_v44 = vsub.f32 %v2406_v21, %v2460_v32  ;;  %v1190_v2 = vsub.f32 %v2410_v23, %v2460_v32 }
 0x29d   : >> { %1944 = vpow2.f32 %v1217_v6  ;;  %v1237_v16 = vmul.f32 1.442695, %v1187_v38  ;;  %v1239_v18 = vmul.f32 1.442695, %v1188_v41  ;;  %v1191_v46 = vsub.f32 %v2404_v20, %v2460_v32 }
 0x29e   : >> { %1946 = vpow2.f32 %v1219_v50  ;;  %v1241_v21 = vmul.f32 1.442695, %v1189_v44  ;;  %v1192_v4 = vsub.f32 %v2408_v22, %v2460_v32  ;;  %v1243_v23 = vmul.f32 1.442695, %v1190_v2 }
 0x29f   : >> { %1948 = vpow2.f32 %v1221_v8  ;;  %v1193_v50 = vsub.f32 %v2416_v26, %v2460_v32  ;;  %v1245_v20 = vmul.f32 1.442695, %v1191_v46  ;;  %v1194_v8 = vsub.f32 %v2431_v37, %v2460_v32 }
 0x2a0   : >> { %1950 = vpow2.f32 %v1223_v10  ;;  %v1247_v22 = vmul.f32 1.442695, %v1192_v4  ;;  %v1195_v10 = vsub.f32 %v2412_v24, %v2460_v32 }
 0x2a1   : >> { %1952 = vpow2.f32 %v1225_v60  ;;  %v1249_v26 = vmul.f32 1.442695, %v1193_v50  ;;  %v1196_v60 = vsub.f32 %v2425_v31, %v2460_v32  ;;  %v1251_v37 = vmul.f32 1.442695, %v1194_v8 }
 0x2a2   : >> { %v2487_v49 = vpop.eup %1928  ;;  %1954 = vpow2.f32 %v1227_v15  ;;  %v1197_v15 = vsub.f32 %v2443_v47, %v2460_v32  ;;  %v1253_v24 = vmul.f32 1.442695, %v1195_v10 }
 0x2a3   : >> { %v2492_v51 = vpop.eup %1930  ;;  %1956 = vpow2.f32 %v1229_v12  ;;  %v1198_v12 = vsub.f32 %v2455_v57, %v2460_v32  ;;  %v1255_v31 = vmul.f32 1.442695, %v1196_v60 }
 0x2a4   : >> { %v1265_v54 = vadd.f32 %v2492_v51, %v2487_v49  ;;  %v2498_v55 = vpop.eup %1932  ;;  %1958 = vpow2.f32 %v1231_v14  ;;  %v1199_v14 = vsub.f32 %v2437_v42, %v2460_v32  ;;  %v1257_v47 = vmul.f32 1.442695, %v1197_v15 }
 0x2a5   : >> { %v2503_v59 = vpop.eup %1934  ;;  %1960 = vpow2.f32 %v1233_v17  ;;  %v1200_v17 = vsub.f32 %v2449_v52, %v2460_v32  ;;  %v1259_v57 = vmul.f32 1.442695, %v1198_v12 }
 0x2a6   : >> { %v1266_v58 = vadd.f32 %v2498_v55, %v1265_v54  ;;  %v2508_v62 = vpop.eup %1936  ;;  %1962 = vpow2.f32 %v1235_v19  ;;  %v1261_v19 = vmul.f32 1.442695, %v1199_v14 }
 0x2a7   : >> { %v2513_v27 = vpop.eup %1938  ;;  %1964 = vpow2.f32 %v1237_v16  ;;  %v1263_v44 = vmul.f32 1.442695, %v1200_v17 }
 0x2a8   : >> { %v1267_v61 = vadd.f32 %v2503_v59, %v1266_v58  ;;  %v2518_v30 = vpop.eup %1940  ;;  %1966 = vpow2.f32 %v1239_v18 }
 0x2a9   : >> { %v2523_v36 = vpop.eup %1942  ;;  %1968 = vpow2.f32 %v1241_v21 }
 0x2aa   : >> { %v1268_v25 = vadd.f32 %v2508_v62, %v1267_v61  ;;  %v2528_v40 = vpop.eup %1944  ;;  %1970 = vpow2.f32 %v1243_v23 }
 0x2ab   : >> { %v2533_v1 = vpop.eup %1946  ;;  %1972 = vpow2.f32 %v1245_v20 }
 0x2ac   : >> { %v1269_v29 = vadd.f32 %v2513_v27, %v1268_v25  ;;  %v2538_v0 = vpop.eup %1948  ;;  %1974 = vpow2.f32 %v1247_v22 }
 0x2ad   : >> { %v2543_v5 = vpop.eup %1950  ;;  %1976 = vpow2.f32 %v1249_v26 }
 0x2ae   : >> { %v1270_v34 = vadd.f32 %v2518_v30, %v1269_v29  ;;  %v2548_v48 = vpop.eup %1952  ;;  %1978 = vpow2.f32 %v1251_v37 }
 0x2af   : >> { %v2553_v9 = vpop.eup %1954  ;;  %1980 = vpow2.f32 %v1253_v24 }
 0x2b0   : >> { %v1271_v39 = vadd.f32 %v2523_v36, %v1270_v34  ;;  %v2558_v53 = vpop.eup %1956  ;;  %1982 = vpow2.f32 %v1255_v31 }
 0x2b1   : >> { %v2563_v56 = vpop.eup %1958  ;;  %1984 = vpow2.f32 %v1257_v47 }
 0x2b2   : >> { %v1272_v43 = vadd.f32 %v2528_v40, %v1271_v39  ;;  %v2568_v13 = vpop.eup %1960  ;;  %1986 = vpow2.f32 %v1259_v57 }
 0x2b3   : >> { %v2573_v63 = vpop.eup %1962  ;;  %1988 = vpow2.f32 %v1261_v19 }
 0x2b4   : >> { %v1273_v3 = vadd.f32 %v2533_v1, %v1272_v43  ;;  %v2578_v28 = vpop.eup %1964  ;;  %1990 = vpow2.f32 %v1263_v44 }
 0x2b5   : >> { %v2583_v33 = vpop.eup %1966 }
 0x2b6   : >> { %v1274_v45 = vadd.f32 %v2538_v0, %v1273_v3  ;;  %v2588_v38 = vpop.eup %1968 }
 0x2b7   : >> { %v2593_v41 = vpop.eup %1970 }
 0x2b8   : >> { %v1275_v7 = vadd.f32 %v2543_v5, %v1274_v45  ;;  %v1973_v42 = vpop.eup %1972 }
 0x2b9   : >> { %v1975_v3 = vpop.eup %1974 }
 0x2ba   : >> { %v1276_v6 = vadd.f32 %v2548_v48, %v1275_v7  ;;  %v1977_v18 = vpop.eup %1976 }
 0x2bb   : >> { %v1979_v32 = vpop.eup %1978 }
 0x2bc   : >> { %v1277_v11 = vadd.f32 %v2553_v9, %v1276_v6  ;;  %v1981_v46 = vpop.eup %1980 }
 0x2bd   : >> { %v1983_v7 = vpop.eup %1982 }
 0x2be   : >> { %v1278_v54 = vadd.f32 %v2558_v53, %v1277_v11  ;;  %v1985_v23 = vpop.eup %1984 }
 0x2bf   : >> { %v1987_v50 = vpop.eup %1986 }
 0x2c0   : >> { %v1279_v58 = vadd.f32 %v2563_v56, %v1278_v54  ;;  %v1989_v11 = vpop.eup %1988 }
 0x2c1   : >> { %v1991_v22 = vpop.eup %1990 }
 0x2c2   : >> { %v1280_v61 = vadd.f32 %v2568_v13, %v1279_v58 }
 0x2c4   : >> { %v1281_v25 = vadd.f32 %v2573_v63, %v1280_v61 }
 0x2c6   : >> { %v1282_v29 = vadd.f32 %v2578_v28, %v1281_v25 }
 0x2c8   : >> { %v1283_v34 = vadd.f32 %v2583_v33, %v1282_v29 }
 0x2ca   : >> { %v1284_v39 = vadd.f32 %v2588_v38, %v1283_v34 }
 0x2cc   : >> { %v1285_v43 = vadd.f32 %v2593_v41, %v1284_v39 }
 0x2ce   : >> { %v1286_v16 = vadd.f32 %v1973_v42, %v1285_v43 }
 0x2d0   : >> { %v1287_v2 = vadd.f32 %v1975_v3, %v1286_v16 }
 0x2d2   : >> { %v1288_v52 = vadd.f32 %v1977_v18, %v1287_v2 }
 0x2d4   : >> { %v1289_v45 = vadd.f32 %v1979_v32, %v1288_v52 }
 0x2d6   : >> { %v1290_v21 = vadd.f32 %v1981_v46, %v1289_v45 }
 0x2d8   : >> { %v1291_v4 = vadd.f32 %v1983_v7, %v1290_v21 }
 0x2da   : >> { %v1292_v6 = vadd.f32 %v1985_v23, %v1291_v4 }
 0x2dc   : >> { %v1293_v20 = vadd.f32 %v1987_v50, %v1292_v6 }
 0x2de   : >> { %v1294_v8 = vadd.f32 %v1989_v11, %v1293_v20 }
 0x2e0   : >> { %v1295_v54 = vadd.f32 %v1991_v22, %v1294_v8 }
 0x2e2   : >> { %v1296_v10 = vrot.slane %v1295_v54, 4 }
 0x2e4   : >> { %v1297_v26 = vadd.f32 %v1296_v10, %v1295_v54 }
 0x2e6   : >> { %v1298_v58 = vrot.slane %v1297_v26, 2 }
 0x2e8   : >> { %v1299_v60 = vadd.f32 %v1298_v58, %v1297_v26  ;;  %v1404_v26 = vld [vmem:[%s1403_s17] sm:$0x3]  ;;  %s2107_s17 = smov (%p849_p0), [#allocation4]  }
 0x2e9   : > { %s1998_s0 = sshll.u32 (%p849_p0), %s2107_s17, 4  ;;  %s1999_s0 = int_to_ptr.vmem [resolvable:$false] %s1998_s0 }
 0x2ea   : >> { %v1300_v37 = vrot.slane %v1299_v60, 1  ;;  %s2000_s28 = scalar_lea.vmem (%p849_p0), %s1999_s0, 128  ;;  %p2001_p5 = scmp.lt.s32.totalorder (%p849_p0), %s1468_s22, %s1999_s0 }
 0x2eb   : > { %p2002_p6 = scmp.lt.s32.totalorder (%p849_p0), %s2000_s28, %s1994_s16 }
 0x2ec   : >> { %v1301_v61 = vadd.f32 %v1300_v37, %v1299_v60 }
 0x2ed   : > { %p2003_p7 = por (%p849_p0), %p2002_p6, %p2001_p5 }
 0x2ee   : >> { %1992 = vrcp.f32 %v1301_v61 }
 0x2ef   : > { %p2004_p9 = pnand (%p849_p0), %p2003_p7, %p1997_p4 }
 0x2fb   : >> { %v1993_v15 = vpop.eup %1992 }
 0x2fc   : >> { %v1333_v24 = vmul.f32 %v1993_v15, %v1989_v11  ;;  %v1334_v25 = vmul.f32 %v1993_v15, %v1991_v22  ;;  %v1317_v12 = vmul.f32 %v1993_v15, %v2558_v53  ;;  %v1318_v31 = vmul.f32 %v1993_v15, %v2563_v56  ;;  %v1925_v22 = vld [vmem:[%s2485_s11] ss:$8 sps:$4 sm:$0xff]  }
 0x2fd   : >> { %v1331_v29 = vmul.f32 %v1993_v15, %v1985_v23  ;;  %v1332_v14 = vmul.f32 %v1993_v15, %v1987_v50  ;;  %v1315_v47 = vmul.f32 %v1993_v15, %v2548_v48  ;;  %v1316_v34 = vmul.f32 %v1993_v15, %v2553_v9 }
 0x2fe   : >> { %v1350_v17 = vpack.c.bf16 %v1334_v25, %v1333_v24  ;;  %v1342_v57 = vpack.c.bf16 %v1318_v31, %v1317_v12  ;;  %v1329_v39 = vmul.f32 %v1993_v15, %v1981_v46  ;;  %v1330_v19 = vmul.f32 %v1993_v15, %v1983_v7 }
 0x2ff   : >> { %v1349_v43 = vpack.c.bf16 %v1332_v14, %v1331_v29  ;;  %v1327_v16 = vmul.f32 %v1993_v15, %v1977_v18  ;;  %v1328_v2 = vmul.f32 %v1993_v15, %v1979_v32  ;;  %v1325_v52 = vmul.f32 %v1993_v15, %v1973_v42 }
 0x300   : >> { %1738 = vmatprep.subr.bf16.mxu1 %v1350_v17  ;;  %v1348_v44 = vpack.c.bf16 %v1330_v19, %v1329_v39  ;;  %v1326_v53 = vmul.f32 %v1993_v15, %v1975_v3  ;;  %v1341_v56 = vpack.c.bf16 %v1316_v34, %v1315_v47  ;;  %v1323_v21 = vmul.f32 %v1993_v15, %v2588_v38 }
 0x301   : >> { %1739 = vmatpush3.bf16.msra.mxu1 %v1342_v57  ;;  %v1347_v45 = vpack.c.bf16 %v1328_v2, %v1327_v16  ;;  %v1313_v48 = vmul.f32 %v1993_v15, %v2538_v0  ;;  %v1314_v9 = vmul.f32 %v1993_v15, %v2543_v5  ;;  %v1324_v46 = vmul.f32 %v1993_v15, %v2593_v41 }
 0x302   : >> { %1740 = vmatprep.subr.bf16.mxu1 %v1349_v43  ;;  %v1346_v4 = vpack.c.bf16 %v1326_v53, %v1325_v52  ;;  %v1321_v7 = vmul.f32 %v1993_v15, %v2578_v28  ;;  %v1322_v18 = vmul.f32 %v1993_v15, %v2583_v33  ;;  %v1311_v23 = vmul.f32 %v1993_v15, %v2528_v40 }
 0x303   : >> { %v1345_v32 = vpack.c.bf16 %v1324_v46, %v1323_v21  ;;  %v1340_v3 = vpack.c.bf16 %v1314_v9, %v1313_v48  ;;  %v1312_v38 = vmul.f32 %v1993_v15, %v2533_v1  ;;  %v1309_v5 = vmul.f32 %v1993_v15, %v2518_v30 }
 0x304   : >> { %v1344_v42 = vpack.c.bf16 %v1322_v18, %v1321_v7  ;;  %v1310_v41 = vmul.f32 %v1993_v15, %v2523_v36  ;;  %v1307_v33 = vmul.f32 %v1993_v15, %v2508_v62  ;;  %v1308_v6 = vmul.f32 %v1993_v15, %v2513_v27 }
 0x305   : >> { %1741 = vmatpush3.bf16.msra.mxu1 %v1341_v56  ;;  %v1339_v0 = vpack.c.bf16 %v1312_v38, %v1311_v23  ;;  %v1305_v1 = vmul.f32 %v1993_v15, %v2498_v55  ;;  %v1306_v50 = vmul.f32 %v1993_v15, %v2503_v59  ;;  %v1319_v20 = vmul.f32 %v1993_v15, %v2568_v13 }
 0x306   : >> { %1742 = vmatprep.subr.bf16.mxu1 %v1348_v44  ;;  %v1338_v28 = vpack.c.bf16 %v1310_v41, %v1309_v5  ;;  %v1337_v40 = vpack.c.bf16 %v1308_v6, %v1307_v33  ;;  %v1320_v30 = vmul.f32 %v1993_v15, %v2573_v63  ;;  %v1303_v11 = vmul.f32 %v1993_v15, %v2487_v49 }
 0x307   : >> { %v1336_v36 = vpack.c.bf16 %v1306_v50, %v1305_v1  ;;  %v1304_v62 = vmul.f32 %v1993_v15, %v2492_v51  ;;  %v2105_v55 = vmov 0.0  }
 0x308   : >> { %v1343_v27 = vpack.c.bf16 %v1320_v30, %v1319_v20 }
 0x309   : >> { %1743 = vmatpush3.bf16.msra.mxu1 %v1340_v3  ;;  %v1335_v8 = vpack.c.bf16 %v1304_v62, %v1303_v11 }
 0x30a   : >> { %1744 = vmatprep.subr.bf16.mxu1 %v1347_v45 }
 0x30d   : >> { %1745 = vmatpush3.bf16.msra.mxu1 %v1339_v0 }
 0x30e   : >> { %1746 = vmatprep.subr.bf16.mxu1 %v1346_v4 }
 0x311   : >> { %1747 = vmatpush3.bf16.msra.mxu1 %v1338_v28 }
 0x312   : >> { %1748 = vmatprep.subr.bf16.mxu1 %v1345_v32 }
 0x315   : >> { %1749 = vmatpush3.bf16.msra.mxu1 %v1337_v40 }
 0x316   : >> { %1750 = vmatprep.subr.bf16.mxu1 %v1344_v42 }
 0x319   : >> { %1751 = vmatpush3.bf16.msra.mxu1 %v1336_v36 }
 0x31a   : >> { %1752 = vmatprep.subr.bf16.mxu1 %v1343_v27 }
 0x31d   : >> { %1753 = vmatpush3.bf16.msra.mxu1 %v1335_v8 }
 0x31e   : >> { %1806 = vmatprep.subr.bf16.mxu1 %v2105_v55 }
 0x320   : >> { %1394 = vmatmul.mubr.bf16.vlgmr.msra.gmra.mxu1 %v1925_v22 }
 0x321   : >> { %1808 = vmatprep.mubr.msk.bf16.mxu1 %vm2106_vm3, %v2105_v55 }
 0x3e0   : >> { %v1754_v59 = vpop.f32.mrf.mxu1 }
 0x3e2   : >> { %v1755_v13 = vpop.f32.mrf.mxu1 }
 0x3e3   : >> { %v1756_v49 = vadd.f32 %v1755_v13, %v1754_v59 }
 0x3e4   : >> { %v1757_v63 = vpop.f32.mrf.mxu1 }
 0x3e6   : >> { %v1758_v54 = vpop.f32.mrf.mxu1 }
 0x3e7   : >> { %v1759_v10 = vadd.f32 %v1758_v54, %v1757_v63 }
 0x3e9   : >> { %v1405_v51 = vpack.c.bf16 %v1759_v10, %v1756_v49 }
 0x3eb   : >> { %1807 = vmatpush3.bf16.msra.mxu1 %v1405_v51 }
 0x3ee   : >> { %1809 = vmatmul.mubr.msk.bf16.vlgmr.msra.gmra.mxu1 %vm922_vm2, %v1404_v26 }
 0x4ae   : >> { %v1443_v58 = vpop.f32.mrf.mxu1 }
 0x4af   : >> { %v1449_v60 = vadd.f32 %v2098_v35, %v1443_v58  }
 0x4b0   : >> { %v1810_v37 = vpop.f32.mrf.mxu1  ;;  %851 = sbr.rel (!%p849_p0) target bundleno = 274 (0x112), region = 97 }
 0x4b1   : >> { %v2700_v35 = vmov %v1449_v60  ;;  %1450 = vst [vmem:[%s308_s30] sm:$0xf] (%p849_p0), %v1449_v60 }
 0x4b2   : >> { %v1446_v61 = vpop.f32.mrf.mxu1 }
 0x4b4   : >> { %v1811_v15 = vpop.f32.mrf.mxu1 }
 0x4b5   : > { %2007 = shalt.err (!%p2004_p9)
}
 0x4b6   : > { %s2008_s27 = scalar_lea.hbm %s1465_s12, 64  ;;  %s2012_s18 = scalar_lea.hbm %s2688_s7, 256 }
 0x4b7   : > { %p2009_p10 = scmp.ne.s32.totalorder %s1465_s12, %s2008_s27  ;;  %p2013_p13 = scmp.lt.s32.totalorder %s1465_s12, %s2688_s7 }
 0x4b8   : > { %p2014_p0 = scmp.lt.s32.totalorder %s2012_s18, %s2008_s27 }
 0x4b9   : > { %p2010_p11 = pnand %p2009_p10, %p2199_p3 }
 0x4ba   : > { %p2015_p1 = por %p2014_p0, %p2013_p13 }
 0x4bb   : > { %p2011_p12 = pneg %p2010_p11 }
 0x4bd   : > { %p2016_p2 = pnand %p2015_p1, %p2011_p12 }
 0x4bf   : > { %2019 = shalt.err (!%p2016_p2)
}
 0x4c0   : > { %1815 = dma.vmem_to_hbm [thread:$0]  (%p2199_p3), %s1468_s22, 64, %s1465_s12, %s1452_s13  }
 0x4c1 PF: > { %p1821_p4 = scmp.ge.s32.totalorder %s2094_s8, 2  ;;  %s1479_s0 = sand.u32 1, %s2066_s24  }
 0x4c2   : > { %s1480_s10 = scalar_lea.sflag [#allocation5], %s1479_s0 }
 0x4c3   : > { %p1818_p5 = pnand %p1821_p4, %p2208_p8 }
 0x4c5   : > { %p1819_p6 = pneg %p1818_p5 }
 0x4c7   : > { %2061 = dma.done.wait (%p1819_p6), %s1480_s10, 64  }
 0x4c8   : > { %2063 = vsyncadd (%p1819_p6), %s1480_s10, 4294967232  ;;  %s20_s8 = sadd.s32 1, %s2094_s8   ;;  %s2702_s28 = sld [smem:[#allocation7_spill]] }
 0x4c9   : > { %p17_p7 = scmp.ge.s32.totalorder %s20_s8, 6   ;;  %s2703_s14 = sld [smem:[#allocation8_spill]] }
 0x4ca   : > { %s2704_s30 = sld [smem:[#allocation9_spill]]  ;;  %s2705_s24 = smov %s2070_s25 }
 0x4cb   : > { %s2706_s25 = smov %s2074_s26  ;;  %s2707_s26 = smov %s2217_s19 }
 0x4cc   : > { %s2708_s27 = smov %s2086_s29  ;;  %19 = sbr.rel (!%p17_p7) target bundleno = 7 (0x7), region = 108 }
 0x4cf   : > { %s2709_s29 = smov %s2703_s14 }
 0x4d1   :  { %1485 = vsyncpa [#allocation5], 1 }
 0x4d2   :  { %1487 = vsyncpa [#allocation5 + $0x1], 1 }

</bundles_post_ra>
